<compile_context>
chip_gen: v6e
topology: v6e:2x2x1
jax: 0.10.0
libtpu: 0.0.40
codegen_flags: <defaults>
</compile_context>

<pallas_src>
import functools

import jax
import jax.numpy as jnp
from jax.experimental import pallas as pl
from jax.experimental.pallas import tpu as pltpu


def _round_up(x, m):
    return ((x + m - 1) // m) * m


def ground_trans_kernel(xh_ref, xl_ref,
                        wgp_ref, bgp_ref,
                        wth_ref, bth_ref,
                        wz_ref, bz_ref,
                        gamma_ref, beta_ref,
                        out_ref,
                        *, n_h_valid, n_l_valid):
    # Per-batch-sample tiles (leading batch dim squeezed by the BlockSpec).
    xh = xh_ref[...]                 # (C, Nh_pad)  bf16, lane = spatial
    xl = xl_ref[...]                 # (C, Nl_pad)  bf16
    inter = wth_ref.shape[0]
    nh_pad = xh.shape[1]
    nl_pad = xl.shape[1]

    # Fused g/phi 1x1 convs on x_high (bf16 MXU, f32 accumulate):
    #   (2*inter, C) @ (C, Nh_pad) -> (2*inter, Nh_pad)
    gp = jnp.dot(wgp_ref[...], xh, preferred_element_type=jnp.float32)
    gp = gp + bgp_ref[...]
    if n_h_valid != nh_pad:
        # Zero padded Nh columns so the bias does not contaminate G @ P^T.
        lane_h = jax.lax.broadcasted_iota(jnp.int32, gp.shape, 1)
        gp = jnp.where(lane_h < n_h_valid, gp, 0.0)
    # inter is a multiple of 8 for the default config (in_channels//2), so these
    # slices land on f32 sublane-tile boundaries (no relayout copy).
    g_t = gp[:inter, :]              # G = g(x_high)   as (inter, Nh_pad)
    phi_t = gp[inter:, :]            # P = phi(x_high) as (inter, Nh_pad)

    # theta 1x1 conv on x_low: (inter, C) @ (C, Nl_pad) -> (inter, Nl_pad)
    theta_t = jnp.dot(wth_ref[...], xl,
                      preferred_element_type=jnp.float32) + bth_ref[...]

    # Tiny Gram matrix of the reassociated attention: m = G @ P^T  (inter, inter).
    # Kept in f32 (small matmul, cheap; preserves precision of the attention map).
    m = jax.lax.dot_general(g_t, phi_t, (((1,), (1,)), ((), ())),
                            preferred_element_type=jnp.float32)

    # Fold W_z (with 1/Nh pre-folded in the wrapper) into the Gram matrix:
    #   (C, inter) @ (inter, inter) -> (C, inter)   -- negligible cost.
    wzm = jnp.dot(wz_ref[...], m, preferred_element_type=jnp.float32)

    # z = Wzm @ T + bz : (C, Nl_pad).  This replaces the two matmuls
    # (m @ theta) and (Wz @ y) of the unfused formulation.
    z = jnp.dot(wzm, theta_t, preferred_element_type=jnp.float32) + bz_ref[...]

    # GroupNorm(1, C): single-pass stats over the *valid* lanes only.
    if n_l_valid != nl_pad:
        lane_l = jax.lax.broadcasted_iota(jnp.int32, z.shape, 1)
        zm = jnp.where(lane_l < n_l_valid, z, 0.0)
    else:
        zm = z
    n_elems = z.shape[0] * n_l_valid
    s = jnp.sum(zm)
    ss = jnp.sum(zm * zm)
    mean = s / n_elems
    var = jnp.maximum(ss / n_elems - mean * mean, 0.0)   # clamp: avoid NaN rsqrt
    inv = jax.lax.rsqrt(var + 1e-5)
    scale = gamma_ref[...] * inv                          # (C, 1)
    shift = beta_ref[...] - mean * scale                  # (C, 1)
    out_ref[...] = z * scale + shift                      # lane-dense (C, Nl_pad)


def ground_trans(x_high, x_low, params):
    """x_high, x_low: NCHW float32.  Returns NCHW float32 (same as PyTorch module)."""
    B, C, Hh, Wh = x_high.shape
    _, _, Hl, Wl = x_low.shape
    Nh = Hh * Wh
    Nl = Hl * Wl
    inter = params["wg"].shape[1]

    # Lane-dense padding of the spatial axes (zero-fill).
    Nh_pad = _round_up(Nh, 128)
    Nl_pad = _round_up(Nl, 128)

    # Channels-first, spatially flattened -- no HBM transpose passes.
    xh = x_high.reshape(B, C, Nh)
    xl = x_low.reshape(B, C, Nl)
    if Nh_pad != Nh:
        xh = jnp.pad(xh, ((0, 0), (0, 0), (0, Nh_pad - Nh)))
    if Nl_pad != Nl:
        xl = jnp.pad(xl, ((0, 0), (0, 0), (0, Nl_pad - Nl)))
    # bf16 for the MXU + halved HBM traffic on the dominant activation streams.
    xh = xh.astype(jnp.bfloat16)
    xl = xl.astype(jnp.bfloat16)

    # Tiny weights, pre-transposed to (Cout, Cin); g & phi fused.
    wgp_t = jnp.concatenate([params["wg"], params["wph"]], axis=1).T.astype(jnp.bfloat16)
    bgp = jnp.concatenate([params["bg"], params["bph"]], axis=1).T     # (2*inter, 1) f32
    wth_t = params["wth"].T.astype(jnp.bfloat16)                       # (inter, C)
    bth = params["bth"].T                                              # (inter, 1) f32
    wz_t = (params["wz"].T * (1.0 / Nh)).astype(jnp.float32)           # (C, inter), 1/Nh folded
    bz = params["bz"].T                                                # (C, 1)
    gamma = params["gamma"].T                                          # (C, 1)
    beta = params["beta"].T                                            # (C, 1)

    # Per-step VMEM footprint (double-buffered activation/output streams +
    # resident weights + live f32 intermediates), with 2x headroom.  Capped at
    # 64 MiB so it is valid on v7x; floored at 32 MiB so v5e's 16 MiB default
    # scoped limit never bites.
    io_bytes = 2 * (C * Nh_pad * 2 + C * Nl_pad * 2 + C * Nl_pad * 4)
    w_bytes = 3 * inter * C * 2 + 4 * (C * inter + 3 * inter + 3 * C)
    live_bytes = 4 * (2 * inter * Nh_pad + inter * Nl_pad + 2 * C * Nl_pad
                      + inter * inter + C * inter)
    vmem_limit = int(min(64 * 1024 * 1024,
                         max(32 * 1024 * 1024, 2 * (io_bytes + w_bytes + live_bytes))))

    kernel = functools.partial(ground_trans_kernel, n_h_valid=Nh, n_l_valid=Nl)

    out = pl.pallas_call(
        kernel,
        out_shape=jax.ShapeDtypeStruct((B, C, Nl_pad), jnp.float32),
        grid=(B,),
        in_specs=[
            pl.BlockSpec((None, C, Nh_pad), lambda b: (b, 0, 0)),   # x_high (C, Nh_pad)
            pl.BlockSpec((None, C, Nl_pad), lambda b: (b, 0, 0)),   # x_low  (C, Nl_pad)
            pl.BlockSpec((2 * inter, C), lambda b: (0, 0)),         # fused g/phi weight
            pl.BlockSpec((2 * inter, 1), lambda b: (0, 0)),         # fused g/phi bias
            pl.BlockSpec((inter, C), lambda b: (0, 0)),             # theta weight
            pl.BlockSpec((inter, 1), lambda b: (0, 0)),             # theta bias
            pl.BlockSpec((C, inter), lambda b: (0, 0)),             # W_z weight (1/Nh folded)
            pl.BlockSpec((C, 1), lambda b: (0, 0)),                 # W_z bias
            pl.BlockSpec((C, 1), lambda b: (0, 0)),                 # GroupNorm gamma
            pl.BlockSpec((C, 1), lambda b: (0, 0)),                 # GroupNorm beta
        ],
        out_specs=pl.BlockSpec((None, C, Nl_pad), lambda b: (b, 0, 0)),
        compiler_params=pltpu.CompilerParams(
            dimension_semantics=("parallel",),
            vmem_limit_bytes=vmem_limit),
    )(xh, xl, wgp_t, bgp, wth_t, bth, wz_t, bz, gamma, beta)

    # Drop lane padding, then (B, C, Nl) -> NCHW without any transpose.
    if Nl_pad != Nl:
        out = out[:, :, :Nl]
    return out.reshape(B, C, Hl, Wl)


def ground_trans_reference(x_high, x_low, params):
    """Pure-JAX f32 reference mirroring the PyTorch forward (non-reassociated)."""
    B, C, Hh, Wh = x_high.shape
    _, _, Hl, Wl = x_low.shape
    Nh, Nl = Hh * Wh, Hl * Wl
    xh = jnp.transpose(x_high.reshape(B, C, Nh), (0, 2, 1))
    xl = jnp.transpose(x_low.reshape(B, C, Nl), (0, 2, 1))
    g_x = xh @ params["wg"] + params["bg"]
    phi_x = xh @ params["wph"] + params["bph"]
    theta_x = xl @ params["wth"] + params["bth"]
    f = jnp.einsum("bqc,bkc->bqk", theta_x, phi_x) / Nh
    y = f @ g_x
    z = y @ params["wz"] + params["bz"]
    mean = jnp.mean(z, axis=(1, 2), keepdims=True)
    var = jnp.mean((z - mean) ** 2, axis=(1, 2), keepdims=True)
    z = (z - mean) / jnp.sqrt(var + 1e-5) * params["gamma"] + params["beta"]
    return jnp.transpose(z, (0, 2, 1)).reshape(B, C, Hl, Wl)


def make_params(key, in_channels):
    inter = in_channels // 2
    ks = jax.random.split(key, 8)
    scale_in = 1.0 / jnp.sqrt(in_channels)
    scale_inter = 1.0 / jnp.sqrt(inter)
    return {
        # 1x1 conv weights stored as (Cin, Cout) for the channels-last reference
        "wg":   jax.random.uniform(ks[0], (in_channels, inter), jnp.float32, -scale_in, scale_in),
        "bg":   jax.random.uniform(ks[1], (1, inter), jnp.float32, -scale_in, scale_in),
        "wth":  jax.random.uniform(ks[2], (in_channels, inter), jnp.float32, -scale_in, scale_in),
        "bth":  jax.random.uniform(ks[3], (1, inter), jnp.float32, -scale_in, scale_in),
        "wph":  jax.random.uniform(ks[4], (in_channels, inter), jnp.float32, -scale_in, scale_in),
        "bph":  jax.random.uniform(ks[5], (1, inter), jnp.float32, -scale_in, scale_in),
        "wz":   jax.random.uniform(ks[6], (inter, in_channels), jnp.float32, -scale_inter, scale_inter),
        "bz":   jax.random.uniform(ks[7], (1, in_channels), jnp.float32, -scale_inter, scale_inter),
        # GroupNorm affine params (PyTorch init: weight=1, bias=0)
        "gamma": jnp.ones((1, in_channels), jnp.float32),
        "beta":  jnp.zeros((1, in_channels), jnp.float32),
    }


if __name__ == "__main__":
    key = jax.random.PRNGKey(0)
    k_h, k_l, k_p = jax.random.split(key, 3)

    B, C = 2, 16           # in_channels=16 -> inter_channels=8 (small analogue of default 64/32)
    Hh = Wh = 8            # x_high spatial -> Nh = 64 (padded to 128 lanes)
    Hl = Wl = 4            # x_low spatial  -> Nl = 16 (padded to 128 lanes)

    x_high = jax.random.normal(k_h, (B, C, Hh, Wh), jnp.float32)
    x_low = jax.random.normal(k_l, (B, C, Hl, Wl), jnp.float32)
    params = make_params(k_p, C)

    z = ground_trans(x_high, x_low, params)
    jax.block_until_ready(z)

    z_ref = ground_trans_reference(x_high, x_low, params)
    assert z.shape == (B, C, Hl, Wl)
    # Projection inputs/weights are bf16 (f32 accumulate), rest of the chain is
    # f32 and the output is GroupNorm'd (O(1)); 3e-2 tolerance is ample.
    assert jnp.allclose(z, z_ref, atol=3e-2, rtol=3e-2), "mismatch vs pure-JAX reference"

    print("KERNEL_OK")
</pallas_src>

<mosaic_0001>
module attributes {stable_mosaic.version = 11 : i64} {
  func.func @ground_trans_kernel(%arg0: i32, %arg1: memref<1x16x128xbf16, #tpu.memory_space<vmem>>, %arg2: memref<1x16x128xbf16, #tpu.memory_space<vmem>>, %arg3: memref<16x16xbf16, #tpu.memory_space<vmem>>, %arg4: memref<16x1xf32, #tpu.memory_space<vmem>>, %arg5: memref<8x16xbf16, #tpu.memory_space<vmem>>, %arg6: memref<8x1xf32, #tpu.memory_space<vmem>>, %arg7: memref<16x8xf32, #tpu.memory_space<vmem>>, %arg8: memref<16x1xf32, #tpu.memory_space<vmem>>, %arg9: memref<16x1xf32, #tpu.memory_space<vmem>>, %arg10: memref<16x1xf32, #tpu.memory_space<vmem>>, %arg11: memref<1x16x128xf32, #tpu.memory_space<vmem>>) attributes {dimension_semantics = [#tpu.dimension_semantics<parallel>], iteration_bounds = array<i64: 2>, scalar_prefetch = 0 : i64, scratch_operands = 0 : i64, tpu.core_type = #tpu.core_type<tc>, window_params = [{transform_indices = @transform_0, window_bounds = array<i64: 1, 16, 128>}, {transform_indices = @transform_1, window_bounds = array<i64: 1, 16, 128>}, {pipeline_mode = #tpu.pipeline_mode<synchronous>, transform_indices = @transform_2, window_bounds = array<i64: 16, 16>}, {pipeline_mode = #tpu.pipeline_mode<synchronous>, transform_indices = @transform_3, window_bounds = array<i64: 16, 1>}, {pipeline_mode = #tpu.pipeline_mode<synchronous>, transform_indices = @transform_4, window_bounds = array<i64: 8, 16>}, {pipeline_mode = #tpu.pipeline_mode<synchronous>, transform_indices = @transform_5, window_bounds = array<i64: 8, 1>}, {pipeline_mode = #tpu.pipeline_mode<synchronous>, transform_indices = @transform_6, window_bounds = array<i64: 16, 8>}, {pipeline_mode = #tpu.pipeline_mode<synchronous>, transform_indices = @transform_7, window_bounds = array<i64: 16, 1>}, {pipeline_mode = #tpu.pipeline_mode<synchronous>, transform_indices = @transform_8, window_bounds = array<i64: 16, 1>}, {pipeline_mode = #tpu.pipeline_mode<synchronous>, transform_indices = @transform_9, window_bounds = array<i64: 16, 1>}, {transform_indices = @transform_10, window_bounds = array<i64: 1, 16, 128>}]} {
    %c0 = arith.constant 0 : index
    %c0_0 = arith.constant 0 : index
    %c0_1 = arith.constant 0 : index
    %0 = vector.load %arg1[%c0, %c0_0, %c0_1] : memref<1x16x128xbf16, #tpu.memory_space<vmem>>, vector<1x16x128xbf16>
    %1 = vector.shape_cast %0 : vector<1x16x128xbf16> to vector<16x128xbf16>
    %c0_2 = arith.constant 0 : index
    %c0_3 = arith.constant 0 : index
    %c0_4 = arith.constant 0 : index
    %2 = vector.load %arg2[%c0_2, %c0_3, %c0_4] : memref<1x16x128xbf16, #tpu.memory_space<vmem>>, vector<1x16x128xbf16>
    %3 = vector.shape_cast %2 : vector<1x16x128xbf16> to vector<16x128xbf16>
    %c0_5 = arith.constant 0 : index
    %c0_6 = arith.constant 0 : index
    %4 = vector.load %arg3[%c0_5, %c0_6] : memref<16x16xbf16, #tpu.memory_space<vmem>>, vector<16x16xbf16>
    %cst = arith.constant dense<0.000000e+00> : vector<16x128xf32>
    %5 = tpu.matmul %4, %1, %cst {dimension_numbers = #tpu.dot_dimension_numbers<[1], [0], [0], [1], [0, 0, 1, 1], [], []>} : vector<16x16xbf16>, vector<16x128xbf16>, vector<16x128xf32> -> vector<16x128xf32>
    %c0_7 = arith.constant 0 : index
    %c0_8 = arith.constant 0 : index
    %6 = vector.load %arg4[%c0_7, %c0_8] : memref<16x1xf32, #tpu.memory_space<vmem>>, vector<16x1xf32>
    %7 = vector.broadcast %6 : vector<16x1xf32> to vector<16x128xf32>
    %8 = arith.addf %5, %7 : vector<16x128xf32>
    %9 = tpu.iota {dimensions = array<i32: 1>} : vector<16x128xi32>
    %c64_i32 = arith.constant 64 : i32
    %10 = vector.broadcast %c64_i32 : i32 to vector<16x128xi32>
    %11 = arith.cmpi slt, %9, %10 : vector<16x128xi32>
    %cst_9 = arith.constant 0.000000e+00 : f32
    %12 = vector.broadcast %cst_9 : f32 to vector<16x128xf32>
    %13 = arith.select %11, %8, %12 : vector<16x128xi1>, vector<16x128xf32>
    %14 = vector.extract_strided_slice %13 {offsets = [0, 0], sizes = [8, 128], strides = [1, 1]} : vector<16x128xf32> to vector<8x128xf32>
    %15 = vector.extract_strided_slice %13 {offsets = [8, 0], sizes = [8, 128], strides = [1, 1]} : vector<16x128xf32> to vector<8x128xf32>
    %c0_10 = arith.constant 0 : index
    %c0_11 = arith.constant 0 : index
    %16 = vector.load %arg5[%c0_10, %c0_11] : memref<8x16xbf16, #tpu.memory_space<vmem>>, vector<8x16xbf16>
    %cst_12 = arith.constant dense<0.000000e+00> : vector<8x128xf32>
    %17 = tpu.matmul %16, %3, %cst_12 {dimension_numbers = #tpu.dot_dimension_numbers<[1], [0], [0], [1], [0, 0, 1, 1], [], []>} : vector<8x16xbf16>, vector<16x128xbf16>, vector<8x128xf32> -> vector<8x128xf32>
    %c0_13 = arith.constant 0 : index
    %c0_14 = arith.constant 0 : index
    %18 = vector.load %arg6[%c0_13, %c0_14] : memref<8x1xf32, #tpu.memory_space<vmem>>, vector<8x1xf32>
    %19 = vector.broadcast %18 : vector<8x1xf32> to vector<8x128xf32>
    %20 = arith.addf %17, %19 : vector<8x128xf32>
    %cst_15 = arith.constant dense<0.000000e+00> : vector<8x8xf32>
    %21 = tpu.matmul %14, %15, %cst_15 {dimension_numbers = #tpu.dot_dimension_numbers<[1], [1], [0], [0], [0, 0, 1, 0], [], []>} : vector<8x128xf32>, vector<8x128xf32>, vector<8x8xf32> -> vector<8x8xf32>
    %c0_16 = arith.constant 0 : index
    %c0_17 = arith.constant 0 : index
    %22 = vector.load %arg7[%c0_16, %c0_17] : memref<16x8xf32, #tpu.memory_space<vmem>>, vector<16x8xf32>
    %cst_18 = arith.constant dense<0.000000e+00> : vector<16x8xf32>
    %23 = tpu.matmul %22, %21, %cst_18 {dimension_numbers = #tpu.dot_dimension_numbers<[1], [0], [0], [1], [0, 0, 1, 1], [], []>} : vector<16x8xf32>, vector<8x8xf32>, vector<16x8xf32> -> vector<16x8xf32>
    %cst_19 = arith.constant dense<0.000000e+00> : vector<16x128xf32>
    %24 = tpu.matmul %23, %20, %cst_19 {dimension_numbers = #tpu.dot_dimension_numbers<[1], [0], [0], [1], [0, 0, 1, 1], [], []>} : vector<16x8xf32>, vector<8x128xf32>, vector<16x128xf32> -> vector<16x128xf32>
    %c0_20 = arith.constant 0 : index
    %c0_21 = arith.constant 0 : index
    %25 = vector.load %arg8[%c0_20, %c0_21] : memref<16x1xf32, #tpu.memory_space<vmem>>, vector<16x1xf32>
    %26 = vector.broadcast %25 : vector<16x1xf32> to vector<16x128xf32>
    %27 = arith.addf %24, %26 : vector<16x128xf32>
    %28 = tpu.iota {dimensions = array<i32: 1>} : vector<16x128xi32>
    %c16_i32 = arith.constant 16 : i32
    %29 = vector.broadcast %c16_i32 : i32 to vector<16x128xi32>
    %30 = arith.cmpi slt, %28, %29 : vector<16x128xi32>
    %cst_22 = arith.constant 0.000000e+00 : f32
    %31 = vector.broadcast %cst_22 : f32 to vector<16x128xf32>
    %32 = arith.select %30, %27, %31 : vector<16x128xi1>, vector<16x128xf32>
    %33 = vector.shape_cast %32 : vector<16x128xf32> to vector<1x16x128xf32>
    %cst_23 = arith.constant dense<0.000000e+00> : vector<1xf32>
    %34 = vector.multi_reduction <add>, %33, %cst_23 [1, 2] : vector<1x16x128xf32> to vector<1xf32>
    %35 = vector.shape_cast %34 : vector<1xf32> to vector<1x1x1xf32>
    %36 = vector.extract %35[0, 0, 0] : f32 from vector<1x1x1xf32>
    %37 = arith.mulf %32, %32 : vector<16x128xf32>
    %38 = vector.shape_cast %37 : vector<16x128xf32> to vector<1x16x128xf32>
    %cst_24 = arith.constant dense<0.000000e+00> : vector<1xf32>
    %39 = vector.multi_reduction <add>, %38, %cst_24 [1, 2] : vector<1x16x128xf32> to vector<1xf32>
    %40 = vector.shape_cast %39 : vector<1xf32> to vector<1x1x1xf32>
    %41 = vector.extract %40[0, 0, 0] : f32 from vector<1x1x1xf32>
    %cst_25 = arith.constant 2.560000e+02 : f32
    %42 = arith.divf %36, %cst_25 : f32
    %cst_26 = arith.constant 2.560000e+02 : f32
    %43 = arith.divf %41, %cst_26 : f32
    %44 = arith.mulf %42, %42 : f32
    %45 = arith.subf %43, %44 : f32
    %cst_27 = arith.constant 0.000000e+00 : f32
    %46 = arith.maximumf %45, %cst_27 : f32
    %cst_28 = arith.constant 9.99999974E-6 : f32
    %47 = arith.addf %46, %cst_28 : f32
    %48 = math.rsqrt %47 : f32
    %c0_29 = arith.constant 0 : index
    %c0_30 = arith.constant 0 : index
    %49 = vector.load %arg9[%c0_29, %c0_30] : memref<16x1xf32, #tpu.memory_space<vmem>>, vector<16x1xf32>
    %50 = vector.broadcast %48 : f32 to vector<16x1xf32>
    %51 = arith.mulf %49, %50 : vector<16x1xf32>
    %c0_31 = arith.constant 0 : index
    %c0_32 = arith.constant 0 : index
    %52 = vector.load %arg10[%c0_31, %c0_32] : memref<16x1xf32, #tpu.memory_space<vmem>>, vector<16x1xf32>
    %53 = vector.broadcast %42 : f32 to vector<16x1xf32>
    %54 = arith.mulf %53, %51 : vector<16x1xf32>
    %55 = arith.subf %52, %54 : vector<16x1xf32>
    %56 = vector.broadcast %51 : vector<16x1xf32> to vector<16x128xf32>
    %57 = arith.mulf %27, %56 : vector<16x128xf32>
    %58 = vector.broadcast %55 : vector<16x1xf32> to vector<16x128xf32>
    %59 = arith.addf %57, %58 : vector<16x128xf32>
    %c0_33 = arith.constant 0 : index
    %c0_34 = arith.constant 0 : index
    %c0_35 = arith.constant 0 : index
    %60 = vector.load %arg11[%c0_33, %c0_34, %c0_35] : memref<1x16x128xf32, #tpu.memory_space<vmem>>, vector<1x16x128xf32>
    %61 = vector.shape_cast %60 : vector<1x16x128xf32> to vector<16x128xf32>
    %62 = vector.shape_cast %59 : vector<16x128xf32> to vector<1x16x128xf32>
    tpu.vector_store %arg11[%c0_33, %c0_34, %c0_35], %62 {strides = array<i32>} : memref<1x16x128xf32, #tpu.memory_space<vmem>>, vector<1x16x128xf32>,
    return
  }
  func.func @transform_0(%arg0: i32) -> (i32, i32, i32) {
    %c0_i32 = arith.constant 0 : i32
    %c0_i32_0 = arith.constant 0 : i32
    %c0_i32_1 = arith.constant 0 : i32
    return %arg0, %c0_i32, %c0_i32_0 : i32, i32, i32
  }
  func.func @transform_1(%arg0: i32) -> (i32, i32, i32) {
    %c0_i32 = arith.constant 0 : i32
    %c0_i32_0 = arith.constant 0 : i32
    %c0_i32_1 = arith.constant 0 : i32
    return %arg0, %c0_i32, %c0_i32_0 : i32, i32, i32
  }
  func.func @transform_2(%arg0: i32) -> (i32, i32) {
    %c0_i32 = arith.constant 0 : i32
    %c0_i32_0 = arith.constant 0 : i32
    %c0_i32_1 = arith.constant 0 : i32
    return %c0_i32, %c0_i32_0 : i32, i32
  }
  func.func @transform_3(%arg0: i32) -> (i32, i32) {
    %c0_i32 = arith.constant 0 : i32
    %c0_i32_0 = arith.constant 0 : i32
    %c0_i32_1 = arith.constant 0 : i32
    return %c0_i32, %c0_i32_0 : i32, i32
  }
  func.func @transform_4(%arg0: i32) -> (i32, i32) {
    %c0_i32 = arith.constant 0 : i32
    %c0_i32_0 = arith.constant 0 : i32
    %c0_i32_1 = arith.constant 0 : i32
    return %c0_i32, %c0_i32_0 : i32, i32
  }
  func.func @transform_5(%arg0: i32) -> (i32, i32) {
    %c0_i32 = arith.constant 0 : i32
    %c0_i32_0 = arith.constant 0 : i32
    %c0_i32_1 = arith.constant 0 : i32
    return %c0_i32, %c0_i32_0 : i32, i32
  }
  func.func @transform_6(%arg0: i32) -> (i32, i32) {
    %c0_i32 = arith.constant 0 : i32
    %c0_i32_0 = arith.constant 0 : i32
    %c0_i32_1 = arith.constant 0 : i32
    return %c0_i32, %c0_i32_0 : i32, i32
  }
  func.func @transform_7(%arg0: i32) -> (i32, i32) {
    %c0_i32 = arith.constant 0 : i32
    %c0_i32_0 = arith.constant 0 : i32
    %c0_i32_1 = arith.constant 0 : i32
    return %c0_i32, %c0_i32_0 : i32, i32
  }
  func.func @transform_8(%arg0: i32) -> (i32, i32) {
    %c0_i32 = arith.constant 0 : i32
    %c0_i32_0 = arith.constant 0 : i32
    %c0_i32_1 = arith.constant 0 : i32
    return %c0_i32, %c0_i32_0 : i32, i32
  }
  func.func @transform_9(%arg0: i32) -> (i32, i32) {
    %c0_i32 = arith.constant 0 : i32
    %c0_i32_0 = arith.constant 0 : i32
    %c0_i32_1 = arith.constant 0 : i32
    return %c0_i32, %c0_i32_0 : i32, i32
  }
  func.func @transform_10(%arg0: i32) -> (i32, i32, i32) {
    %c0_i32 = arith.constant 0 : i32
    %c0_i32_0 = arith.constant 0 : i32
    %c0_i32_1 = arith.constant 0 : i32
    return %arg0, %c0_i32, %c0_i32_0 : i32, i32, i32
  }
}

</mosaic_0001>

<bundles_post_ra>
// kernel: tpu_custom_call.1
= control target key start
LH: loop header
LB: loop body
LE: loop exit
PB: predicated region body
PF: predicated region fallthrough
CT: control target
= control target key end

     0   :  { %s1333_s0 = inlined_call_operand.vmem [shape: bf16[2,16,128], index: 0, kind: input, shape index: {}]   ;;  %s1334_s1 = inlined_call_operand.vmem [shape: bf16[2,16,128], index: 1, kind: input, shape index: {}]   ;;  %s1335_s2 = inlined_call_operand.vmem [shape: bf16[16,16], index: 2, kind: input, shape index: {}]   ;;  %s1336_s3 = inlined_call_operand.vmem [shape: f32[16,1], index: 3, kind: input, shape index: {}]   ;;  %s1337_s4 = inlined_call_operand.vmem [shape: bf16[8,16], index: 4, kind: input, shape index: {}]   ;;  %s1338_s5 = inlined_call_operand.vmem [shape: f32[8,1], index: 5, kind: input, shape index: {}]   ;;  %s1339_s6 = inlined_call_operand.vmem [shape: f32[16,8], index: 6, kind: input, shape index: {}]   ;;  %s1340_s7 = inlined_call_operand.vmem [shape: f32[16,1], index: 7, kind: input, shape index: {}]   ;;  %s1341_s8 = inlined_call_operand.vmem [shape: f32[16,1], index: 8, kind: input, shape index: {}]   ;;  %s1342_s9 = inlined_call_operand.vmem [shape: f32[16,1], index: 9, kind: input, shape index: {}]   ;;  %s1343_s10 = inlined_call_operand.hbm [shape: f32[2,16,128], index: 10, kind: output, shape index: {}]  }
   0x1   :  { %1344 = sst [smem:[#allocation5_spill]] %s1333_s0 }
   0x2   :  { %1345 = sst [smem:[#allocation6_spill]] %s1334_s1 }
   0x3   :  { %15 = vsyncpa [#allocation3], 0 }
   0x4   :  { %17 = vsyncpa [#allocation3 + $0x1], 0  ;;  %s1174_s13 = smov 0   ;;  %s1176_s14 = smov 0  }
   0x5   :  { %s1178_s15 = smov 0   ;;  %s1180_s16 = smov 0  }
   0x6 LB: > { %s1195_s17 = sadd.s32 4294967295, %s1110_s16   ;;  %s925_s18 = sadd.s32 4294967294, %s1110_s16   ;;  %s1110_s16 = sphi %s1180_s16, %s1353_s16   ;;  %s1106_s15 = sphi %s1178_s15, %s1352_s15   ;;  %s1102_s14 = sphi %s1176_s14, %s1351_s14   ;;  %s1098_s13 = sphi %s1174_s13, %s1350_s13  }
   0x7   : > { %s1199_s19 = sadd.s32 1, %s1110_s16   ;;  %s250_s20 = sadd.s32 1, %s1106_s15 }
   0x8   : > { %s247_s21 = ssub.s32 %s1110_s16, %s1199_s19  ;;  %p260_p0 = scmp.ne.s32.totalorder %s1106_s15, %s1102_s14 }
   0x9   : > { %p248_p1 = scmp.eq.s32.totalorder %s247_s21, 0  ;;  %p261_p2 = scmp.eq.s32.totalorder %s1195_s17, 1 }
   0xa   : > { %p266_p3 = scmp.ne.s32.totalorder %s1102_s14, %s1098_s13  ;;  %p267_p4 = scmp.eq.s32.totalorder %s925_s18, 1 }
   0xb   : > { %s1210_s22 = scalar_select %p248_p1, %s1106_s15, %s250_s20  }
   0xc   : > { %p1212_p5 = por %p261_p2, %p260_p0  ;;  %p1216_p6 = por %p267_p4, %p266_p3 }
   0xd   : > { %p928_p7 = scmp.ge.s32.totalorder %s1110_s16, 1  ;;  %p325_p8 = scmp.lt.s32.totalorder %s1110_s16, 3 }
   0xf   : > { %p326_p9 = pnand %p928_p7, %p325_p8 }
  0x10   : > { %p368_p10 = scmp.lt.s32.totalorder (!%p326_p9), %s1195_s17, 1  ;;  %s1348_s0 = sld [smem:[#allocation5_spill]] (!%p326_p9) }
  0x11   : > { %329 = sbr.rel (%p326_p9) target bundleno = 1245 (0x4dd), region = 60  ;;  %s1349_s1 = sld [smem:[#allocation6_spill]] (!%p326_p9) }
  0x12   : > { %s1115_s21 = smov (!%p326_p9), 0.0  }
  0x16   : > { %v1112_v0 = vmov 0.0   ;;  %vm1113_vm0 = vmmov 0   ;;  %v386_v1 = vld [vmem:[%s1336_s3 + $0x8] sm:$0xff]  ;;  %s369_s27 = scalar_select %p368_p10, %s1195_s17, 1  ;;  %v1114_v2 = vmov 0   ;;  %v385_v3 = vld [vmem:[%s1336_s3] sm:$0xff]  ;;  %v453_v9 = vlaneseq }
  0x17   : > { %965 = vmatprep.subr.bf16.mxu0 %v1112_v0  ;;  %967 = vmatprep.mubr.msk.bf16.mxu0 %vm1113_vm0, %v1112_v0  ;;  %v1046_v5 = vld [vmem:[%s1335_s2] sm:$0xff]   ;;  %vm408_vm1 = vcmask 130048   ;;  %v669_v6 = vld [vmem:[%s1340_s7 + $0x8] sm:$0xff]  ;;  %vm586_vm3 = vcmask 64512  }
  0x18   : > { %1043 = vset.pattern.permute.xlu0 %v1114_v2  ;;  %971 = vmatprep.subr.bf16.mxu1 %v1112_v0  ;;  %s950_s28 = sshll.u32 %s369_s27, 3  ;;  %v458_v8 = vld [vmem:[%s1337_s4] sm:$0xf]  ;;  %v454_v12 = vand.u32 127, %v453_v9  ;;  %v585_v28 = vld [vmem:[%s1339_s6 + $0x8] sm:$0xff] }
  0x19   : > { %394 = vperm.xlu0 %1043, %v386_v1   ;;  %973 = vmatprep.mubr.msk.bf16.mxu1 %vm1113_vm0, %v1112_v0  ;;  %s372_s18 = scalar_lea.vmem %s1348_s0, %s950_s28  ;;  %s377_s30 = scalar_lea.vmem %s1349_s1, %s950_s28  ;;  %v584_v19 = vld [vmem:[%s1339_s6] sm:$0xff]  ;;  %v800_v62 = vld [vmem:[%s1341_s8 + $0x8] sm:$0xff] }
  0x1a   : > { %1044 = vset.pattern.permute.xlu1 %v1114_v2  ;;  %v1045_v4 = vld [vmem:[%s372_s18] sm:$0xff]   ;;  %vm455_vm2 = vcmp.lt.s32.totalorder %v454_v12, 64  ;;  %vm761_vm4 = vcmp.lt.s32.totalorder %v454_v12, 16  ;;  %s365_s0 = sand.u32 1, %s1102_s14  }
  0x1b   : > { %966 = vmatpush3.bf16.msra.mxu0 %v1045_v4  ;;  %v1047_v7 = vld [vmem:[%s377_s30] sm:$0xff]   ;;  %s929_s1 = sshll.u32 %s365_s0, 4 }
  0x1c   : > { %977 = vmatprep.subr.mxu0 %v1112_v0  ;;  %972 = vmatpush3.bf16.msra.mxu1 %v1047_v7  ;;  %v459_v20 = vld [vmem:[%s1338_s5] sm:$0xff] }
  0x1d   : > { %389 = vperm.xlu0 %1043, %v385_v3   ;;  %462 = vperm.xlu1 %1044, %v459_v20   ;;  %v668_v21 = vld [vmem:[%s1340_s7] sm:$0xff]  ;;  %v805_v3 = vld [vmem:[%s1342_s9 + $0x8] sm:$0xff] }
  0x1e   : > { %968 = vmatmul.mubr.msk.bf16.vlgmr.msra.gmra.mxu0 %vm408_vm1, %v1046_v5  ;;  %v799_v61 = vld [vmem:[%s1341_s8] sm:$0xff] }
  0x1f   : > { %979 = vmatprep.mubr.msk.f32.mxu0 %vm1113_vm0, %v1112_v0  ;;  %974 = vmatmul.mubr.msk.bf16.vlgmr.msra.gmra.mxu1 %vm408_vm1, %v458_v8  ;;  %v804_v4 = vld [vmem:[%s1342_s9] sm:$0xff] }
  0x20   : > { %984 = vmatprep.mubr.msk.f32.mxu1 %vm586_vm3, %v584_v19 }
  0x21   : > { %677 = vperm.xlu0 %1043, %v669_v6   ;;  %672 = vperm.xlu1 %1044, %v668_v21  }
  0x94   : > { %v395_v10 = vpop.permute.xlu0 %394 }
  0x98   : > { %v390_v15 = vpop.permute.xlu0 %389  ;;  %v463_v26 = vpop.permute.xlu1 %462 }
  0x9c   : > { %v678_v33 = vpop.permute.xlu0 %677  ;;  %v673_v36 = vpop.permute.xlu1 %672 }
  0xde   : > { %v446_v11 = vpop.f32.mrf.mxu0 }
  0xdf   : > { %v447_v18 = vadd.f32 %v446_v11, %v390_v15  ;;  %v508_v22 = vpop.f32.mrf.mxu1 }
  0xe0   : > { %v969_v13 = vpop.f32.mrf.mxu0  ;;  %v509_v29 = vadd.f32 %v508_v22, %v463_v26 }
  0xe1   : > { %v975_v23 = vpop.f32.mrf.mxu1 }
  0xe2   : > { %v449_v14 = vpop.f32.mrf.mxu0 }
  0xe3   : > { %v450_v16 = vadd.f32 %v449_v14, %v395_v10  ;;  %v511_v24 = vpop.f32.mrf.mxu1 }
  0xe4   : > { %v970_v17 = vpop.f32.mrf.mxu0 }
  0xe5   : > { %978 = vmatpush3.xpose.msk.msra.mxu0 %vm455_vm2, %v450_v16  ;;  %v976_v25 = vpop.f32.mrf.mxu1 }
  0xe6   : > { %987 = vmatprep.subr.mxu0 %v509_v29 }
  0xe8   : > { %980 = vmatmul.mubr.msk.f32.vlgmr.msra.gmra.mxu0 %vm455_vm2, %v447_v18 }
  0xe9   : > { %988 = vmatpush3.msra.mxu0 %v509_v29 }
 0x1a8   : > { %v580_v27 = vpop.f32.mrf.mxu0 }
 0x1a9   : > { %982 = vmatprep.subr.mxu1 %v580_v27 }
 0x1aa   : > { %v981_v30 = vpop.f32.mrf.mxu0  ;;  %983 = vmatpush3.msra.mxu1 %v580_v27 }
 0x1ab   : > { %985 = vmatmul.mubr.msk.f32.vlgmr.msra.gmra.mxu1 %vm586_vm3, %v585_v28 }
 0x26b   : > { %v986_v31 = vpop.f32.mrf.mxu1 }
 0x26d   : > { %v659_v32 = vpop.f32.mrf.mxu1 }
 0x26e   : > { %989 = vmatprep.mubr.msk.f32.mxu0 %vm586_vm3, %v659_v32 }
 0x26f   : > { %990 = vmatmul.mubr.msk.f32.vlgmr.msra.gmra.mxu0 %vm586_vm3, %v986_v31 }
 0x32f   : > { %v991_v34 = vpop.f32.mrf.mxu0 }
 0x330   : > { %v1264_v35 = vadd.f32 %v991_v34, %v678_v33 }
 0x331   : > { %v752_v37 = vpop.f32.mrf.mxu0 }
 0x332   : > { %v1266_v38 = vadd.f32 %v752_v37, %v673_v36  ;;  %v763_v39 = vsel %vm761_vm4, %v1264_v35, 0.0 }
 0x333   : > { %v775_v43 = vmul.f32 %v763_v39, %v763_v39 }
 0x334   : > { %v762_v40 = vsel %vm761_vm4, %v1266_v38, 0.0 }
 0x335   : > { %v764_v41 = vadd.f32 %v763_v39, %v762_v40  ;;  %v774_v42 = vmul.f32 %v762_v40, %v762_v40 }
 0x337   : > { %765 = vadd.xlane.f32.xlu1 %v764_v41  ;;  %v776_v44 = vadd.f32 %v775_v43, %v774_v42 }
 0x339   : > { %777 = vadd.xlane.f32.xlu0 %v776_v44 }
 0x3c0   : > { %v766_v45 = vpop.xlane.xlu1 %765 }
 0x3c1   : > { %v767_v46 = vrot.slane %v766_v45, 4 }
 0x3c2   : > { %v778_v47 = vpop.xlane.xlu0 %777 }
 0x3c3   : > { %v768_v48 = vadd.f32 %v767_v46, %v766_v45  ;;  %v779_v49 = vrot.slane %v778_v47, 4 }
 0x3c5   : > { %v769_v50 = vrot.slane %v768_v48, 2  ;;  %v780_v51 = vadd.f32 %v779_v49, %v778_v47 }
 0x3c7   : > { %v781_v52 = vrot.slane %v780_v51, 2  ;;  %v770_v53 = vadd.f32 %v769_v50, %v768_v48 }
 0x3c9   : > { %v771_v54 = vrot.slane %v770_v53, 1  ;;  %v782_v55 = vadd.f32 %v781_v52, %v780_v51 }
 0x3cb   : > { %v772_v56 = vadd.f32 %v771_v54, %v770_v53  ;;  %v783_v57 = vrot.slane %v782_v55, 1 }
 0x3cd   : > { %992 = vpush %v772_v56  ;;  %v784_v58 = vadd.f32 %v783_v57, %v782_v55 }
 0x3cf   : > { %994 = vpush %v784_v58 }
 0x3fe   : > { %s993_s30 = spop %992 }
 0x3ff   : > { %s788_s11 = smul.f32 0.00390625, %s993_s30 }
 0x400   : > { %s995_s12 = spop %994 }
 0x401   : > { %s792_s28 = smul.f32 %s788_s11, %s788_s11  ;;  %v806_v2 = vstv %s788_s11  ;;  %s367_s11 = scalar_lea.vmem [#allocation2], %s929_s1 }
 0x402   : > { %s791_s18 = smul.f32 0.00390625, %s995_s12  ;;  %s1116_s12 = smov [#allocation2]  }
 0x404   : > { %s793_s20 = ssub.f32 %s791_s18, %s792_s28  ;;  %s1054_s28 = sshll.u32 %s1116_s12, 4  ;;  %s1055_s28 = int_to_ptr.vmem [resolvable:$false] %s1054_s28 }
 0x405   : > { %s1056_s18 = scalar_lea.vmem %s1055_s28, 512 }
 0x406   : > { %s794_s25 = smax.f32 %s1115_s21, %s793_s20  ;;  %s851_s21 = sshll.u32 %s367_s11, 4  ;;  %s1286_s21 = int_to_ptr.vmem [resolvable:$true] %s851_s21 }
 0x407   : > { %s795_s26 = sadd.f32 1e-05, %s794_s25  ;;  %s952_s25 = sshll.u32 %s1195_s17, 8 }
 0x408   : > { %s1291_s29 = scalar_lea.hbm %s1343_s10, %s952_s25  ;;  %s1293_s17 = scalar_lea.sflag [#allocation3], %s365_s0 }
 0x409   : > { %v796_v59 = vstv %s795_s26  ;;  %p1057_p0 = scmp.lt.s32.totalorder %s1286_s21, %s1055_s28 }
 0x40a   : > { %1048 = vrsqrt.f32 %v796_v59 }
 0x417   : > { %v1049_v60 = vpop.eup %1048 }
 0x418   : > { %996 = vpush %v1049_v60 }
 0x449   : > { %s997_s30 = spop %996 }
 0x44a   : > { %v801_v63 = vstv %s997_s30  ;;  %s1050_s30 = scalar_lea.vmem %s1286_s21, 256 }
 0x44b   : > { %v802_v0 = vmul.f32 %v801_v63, %v799_v61  ;;  %v803_v1 = vmul.f32 %v801_v63, %v800_v62  ;;  %p1051_p11 = scmp.ne.s32.totalorder %s1286_s21, %s1050_s30  ;;  %p1058_p1 = scmp.lt.s32.totalorder %s1056_s18, %s1050_s30 }
 0x44d   : > { %v807_v5 = vmul.f32 %v806_v2, %v802_v0  ;;  %v808_v6 = vmul.f32 %v806_v2, %v803_v1  ;;  %818 = vperm.xlu1 %1044, %v803_v1   ;;  %813 = vperm.xlu0 %1043, %v802_v0   ;;  %p1052_p12 = pnand %p1051_p11, %p1212_p5  ;;  %p1059_p2 = por %p1058_p1, %p1057_p0 }
 0x44f   : > { %v810_v7 = vsub.f32 %v805_v3, %v808_v6  ;;  %v809_v8 = vsub.f32 %v804_v4, %v807_v5  ;;  %p1053_p13 = pneg %p1052_p12 }
 0x451   : > { %830 = vperm.xlu0 %1043, %v810_v7   ;;  %825 = vperm.xlu1 %1044, %v809_v8   ;;  %p1060_p3 = pnand %p1059_p2, %p1053_p13 }
 0x4c8   : > { %v819_v9 = vpop.permute.xlu1 %818  ;;  %v814_v10 = vpop.permute.xlu0 %813 }
 0x4c9   : > { %v822_v11 = vmul.f32 %v819_v9, %v1264_v35  ;;  %v821_v12 = vmul.f32 %v814_v10, %v1266_v38 }
 0x4cc   : > { %v831_v13 = vpop.permute.xlu0 %830  ;;  %v826_v14 = vpop.permute.xlu1 %825 }
 0x4cd   : > { %v834_v15 = vadd.f32 %v831_v13, %v822_v11  ;;  %v833_v16 = vadd.f32 %v826_v14, %v821_v12 }
 0x4cf   : > { %836 = vst [vmem:[%s367_s11 + $0x8] sm:$0xff] %v834_v15  ;;  %835 = vst [vmem:[%s367_s11] sm:$0xff] %v833_v16 }
 0x4d0   : > { %1063 = shalt.err (!%p1060_p3)
}
 0x4d1   : > { %s1064_s20 = scalar_lea.hbm %s1291_s29, 256  ;;  %s1068_s11 = scalar_lea.hbm %s1343_s10, 512 }
 0x4d2   : > { %p1065_p4 = scmp.ne.s32.totalorder %s1291_s29, %s1064_s20  ;;  %p1069_p9 = scmp.lt.s32.totalorder %s1291_s29, %s1343_s10 }
 0x4d3   : > { %p1070_p10 = scmp.lt.s32.totalorder %s1068_s11, %s1064_s20 }
 0x4d4   : > { %p1066_p7 = pnand %p1065_p4, %p1212_p5 }
 0x4d5   : > { %p1071_p11 = por %p1070_p10, %p1069_p9 }
 0x4d6   : > { %p1067_p8 = pneg %p1066_p7 }
 0x4d8   : > { %p1072_p12 = pnand %p1071_p11, %p1067_p8 }
 0x4da   : > { %1075 = shalt.err (!%p1072_p12)
}
 0x4db   : > { %s1117_s27 = smov 128   ;;  %s1118_s30 = smov 8  }
 0x4dc   : > { %998 = dma.vmem_to_hbm [thread:$0]  (%p1212_p5), %s1286_s21, 256, %s1291_s29, %s1293_s17, %s1117_s27, %s1117_s27, %s1118_s30  }
 0x4dd PF: > { %p1004_p13 = scmp.ge.s32.totalorder %s1110_s16, 2  ;;  %s866_s12 = sand.u32 1, %s1098_s13  }
 0x4de   : > { %s867_s28 = scalar_lea.sflag [#allocation3], %s866_s12 }
 0x4df   : > { %p1001_p0 = pnand %p1004_p13, %p1216_p6 }
 0x4e1   : > { %p1002_p1 = pneg %p1001_p0 }
 0x4e3   : > { %1093 = dma.done.wait (%p1002_p1), %s867_s28, 256  }
 0x4e4   : > { %1095 = vsyncadd (%p1002_p1), %s867_s28, 4294967040  ;;  %p20_p2 = scmp.ge.s32.totalorder %s1199_s19, 4   ;;  %s1350_s13 = smov %s1102_s14 }
 0x4e5   : > { %s1351_s14 = smov %s1106_s15  ;;  %s1352_s15 = smov %s1210_s22 }
 0x4e6   : > { %s1353_s16 = smov %s1199_s19  ;;  %22 = sbr.rel (!%p20_p2) target bundleno = 6 (0x6), region = 98 }
 0x4eb   :  { %872 = vsyncpa [#allocation3], 1 }
 0x4ec   :  { %874 = vsyncpa [#allocation3 + $0x1], 1 }

</bundles_post_ra>
